<compile_context>
chip_gen: v5e
topology: v5e:2x2
jax: 0.10.0
libtpu: 0.0.40
codegen_flags: <defaults>
</compile_context>

<pallas_src>
import functools

import jax
import jax.numpy as jnp
from jax.experimental import pallas as pl
from jax.experimental.pallas import tpu as pltpu

LANE = 128


def _round_up(x, m):
    return ((x + m - 1) // m) * m


def _vmem_capacity_bytes():
    """Physical VMEM of the local TPU (fallback: conservative v7x per-TC value)."""
    try:
        info = pltpu.get_tpu_info()
        cap = getattr(info, "vmem_capacity_bytes", None)
        if cap:
            return int(cap)
    except Exception:
        pass
    return 64 * 1024 * 1024


def _select_tiling(n, vmem_cap, row_tile=None):
    """Pick (n_pad, tm).  tm == n_pad means A_hat is fully VMEM-resident."""
    if row_tile is not None:
        assert row_tile % LANE == 0, "row_tile must be a multiple of 128"
        tm = row_tile
        return _round_up(max(n, tm), tm), tm
    n128 = _round_up(max(n, 1), LANE)      # lane-dense last dims even at tiny N
    resident_budget = int(vmem_cap * 0.35)  # leave room for H ping-pong + pipeline buffers
    if n128 * n128 * 2 <= resident_budget:  # bf16 A_hat fits -> keep resident across layers
        return n128, n128
    tm = 512 if vmem_cap >= (96 << 20) else 256   # v5e/v6e: big tiles; v7x: smaller
    return _round_up(n, tm), tm


# ------------------------------------------------------------------ kernel ---
def _fused_gcn_kernel(x_hbm, a_ref, w_ref, b_ref, p_ref, o_ref,
                      h0, h1, logit_acc, copy_sem,
                      *, num_layers, num_classes, tm):
    li = pl.program_id(0)                 # layer index       (sequential / "arbitrary")
    ri = pl.program_id(1)                 # A_hat row tile    (sequential / "arbitrary")
    last_layer = num_layers - 1
    last_tile = pl.num_programs(1) - 1

    # One-time prologue: DMA node features (already bf16 + padded) from HBM into the
    # layer-0 read buffer (X is read exactly once, never kept as a pipelined input),
    # and clear the pooled-logits accumulator.
    @pl.when(jnp.logical_and(li == 0, ri == 0))
    def _():
        cp = pltpu.make_async_copy(x_hbm, h0, copy_sem)
        cp.start()
        cp.wait()
        logit_acc[...] = jnp.zeros_like(logit_acc)

    rows = pl.ds(pl.multiple_of(ri * tm, tm), tm)

    def layer_step(h_read, h_write):
        # Uniform per-tile work: (A_tile @ H) @ W  -- bf16 MXU operands, f32 accumulate.
        ah = jnp.dot(a_ref[...], h_read[...], preferred_element_type=jnp.float32)
        h_tile = jnp.dot(ah.astype(jnp.bfloat16), w_ref[...],
                         preferred_element_type=jnp.float32) + b_ref[...]

        @pl.when(li < last_layer)
        def _():
            # TODO(synk): F.dropout is a no-op here (inference / training=False);
            # training-mode Bernoulli masking would use pltpu.prng_seed/prng_random_bits.
            h_write[rows, :] = jnp.maximum(h_tile, 0.0).astype(h_write.dtype)

        @pl.when(li == last_layer)
        def _():
            # Last layer: never write H -- fold global_mean_pool into the row-tile loop.
            logit_acc[...] += jnp.dot(p_ref[...], h_tile,
                                      preferred_element_type=jnp.float32)

    # Ping-pong activation buffers so later row tiles of a layer never observe rows
    # already overwritten within that same layer (no read-then-overwrite hazard).
    @pl.when(li % 2 == 0)
    def _():
        layer_step(h0, h1)

    @pl.when(li % 2 == 1)
    def _():
        layer_step(h1, h0)

    # Final grid step: masked log_softmax over pooled logits, single lane-dense store.
    @pl.when(jnp.logical_and(li == last_layer, ri == last_tile))
    def _():
        logits = logit_acc[...]
        cls = jax.lax.broadcasted_iota(jnp.int32, logits.shape, 1)
        logits = jnp.where(cls < num_classes, logits, -1e30)   # mask padded class lanes
        m = jnp.max(logits, axis=1, keepdims=True)
        s = logits - m
        lse = jnp.log(jnp.sum(jnp.exp(s), axis=1, keepdims=True))
        o_ref[...] = (s - lse).astype(o_ref.dtype)


def fused_gcn_forward(a_hat_p, x, weights, biases, pool_p, num_classes, *,
                      tm, vmem_limit_bytes):
    """Single pallas_call: all GCN layers + global_mean_pool + log_softmax.

    a_hat_p : (n_pad, n_pad) bf16 padded normalized adjacency
    pool_p  : (g_pad, n_pad) f32  padded mean-pool matrix
    """
    n_pad = a_hat_p.shape[0]
    g_pad = pool_p.shape[0]
    num_layers = len(weights)
    num_row_tiles = n_pad // tm

    f_pad = _round_up(max([LANE] + [w.shape[0] for w in weights]
                          + [w.shape[1] for w in weights]), LANE)

    x_p = jnp.zeros((n_pad, f_pad), jnp.bfloat16).at[:x.shape[0], :x.shape[1]].set(
        x.astype(jnp.bfloat16))
    w_stack = jnp.stack([
        jnp.zeros((f_pad, f_pad), jnp.bfloat16)
        .at[:w.shape[0], :w.shape[1]].set(w.astype(jnp.bfloat16)) for w in weights])
    b_stack = jnp.stack([
        jnp.zeros((1, f_pad), jnp.float32)
        .at[:, :b.shape[1]].set(b.astype(jnp.float32)) for b in biases])

    kernel = functools.partial(_fused_gcn_kernel, num_layers=num_layers,
                               num_classes=num_classes, tm=tm)

    out = pl.pallas_call(
        kernel,
        out_shape=jax.ShapeDtypeStruct((g_pad, f_pad), jnp.float32),
        grid=(num_layers, num_row_tiles),
        in_specs=[
            pl.BlockSpec(memory_space=pl.ANY),                              # X: HBM, one DMA
            # When tm == n_pad the block index is constant -> A_hat fetched once, resident.
            pl.BlockSpec((tm, n_pad), lambda li, ri: (ri, 0)),              # A_hat row tile
            pl.BlockSpec((None, f_pad, f_pad), lambda li, ri: (li, 0, 0)),  # W_l
            pl.BlockSpec((None, 1, f_pad), lambda li, ri: (li, 0, 0)),      # b_l
            pl.BlockSpec((g_pad, tm), lambda li, ri: (0, ri)),              # pool column tile
        ],
        out_specs=pl.BlockSpec((g_pad, f_pad), lambda li, ri: (0, 0)),
        scratch_shapes=[
            pltpu.VMEM((n_pad, f_pad), jnp.bfloat16),   # H ping buffer (even layers read)
            pltpu.VMEM((n_pad, f_pad), jnp.bfloat16),   # H pong buffer (odd layers read)
            pltpu.VMEM((g_pad, f_pad), jnp.float32),    # pooled-logits accumulator
            pltpu.SemaphoreType.DMA,                    # one-shot X staging DMA
        ],
        compiler_params=pltpu.CompilerParams(
            # Both axes carry cross-iteration dependencies (resident H / accumulators).
            dimension_semantics=("arbitrary", "arbitrary"),
            vmem_limit_bytes=vmem_limit_bytes,
        ),
    )(x_p, a_hat_p, w_stack, b_stack, pool_p)
    return out[:, :num_classes]


# --------------------------------------------------------------- glue (JAX) --
def build_normalized_adjacency(edge_index, edge_attr, num_nodes, padded_size,
                               dtype=jnp.bfloat16):
    """Dense GCN normalization A_hat = D^{-1/2}(A+I)D^{-1/2} (matches PyG GCNConv),
    built directly at the padded size and kernel dtype (padding rows/cols stay zero)."""
    src, dst = edge_index[0], edge_index[1]
    a = jnp.zeros((padded_size, padded_size), jnp.float32)
    a = a.at[dst, src].add(edge_attr.astype(jnp.float32))
    diag = (jnp.arange(padded_size) < num_nodes).astype(jnp.float32)
    a = a + jnp.diag(diag)
    deg = a.sum(axis=1)
    dinv = jnp.where(deg > 0, jax.lax.rsqrt(deg), 0.0)
    return (a * dinv[:, None] * dinv[None, :]).astype(dtype)


def build_mean_pool_matrix(batch, num_graphs, num_nodes, padded_graphs, padded_nodes):
    """P[g, n] = 1/|V_g| if node n belongs to graph g else 0  (global_mean_pool), padded."""
    node_ids = jnp.arange(padded_nodes)
    batch_p = jnp.where(node_ids < num_nodes,
                        jnp.pad(batch, (0, padded_nodes - num_nodes)), -1)
    onehot = (batch_p[None, :] == jnp.arange(padded_graphs)[:, None]).astype(jnp.float32)
    counts = onehot.sum(axis=1, keepdims=True)
    return onehot / jnp.maximum(counts, 1.0)


def init_params(key, in_channels, hidden_dim, num_classes, num_layers):
    """Deterministic glorot-ish init of [(W, b)] for each GCNConv layer."""
    dims = [in_channels] + [hidden_dim] * (num_layers - 1) + [num_classes]
    params = []
    for li in range(num_layers):
        key, wk = jax.random.split(key)
        fan_in, fan_out = dims[li], dims[li + 1]
        scale = jnp.sqrt(6.0 / (fan_in + fan_out))
        w = jax.random.uniform(wk, (fan_in, fan_out), jnp.float32, -scale, scale)
        b = jnp.zeros((1, fan_out), jnp.float32)
        params.append((w, b))
    return params


def gcn_classifier_forward(params, x, edge_index, edge_attr, batch, num_graphs,
                           row_tile=None):
    n = x.shape[0]
    num_classes = params[-1][0].shape[1]
    weights = [w for w, _ in params]
    biases = [b for _, b in params]

    vmem_cap = _vmem_capacity_bytes()
    n_pad, tm = _select_tiling(n, vmem_cap, row_tile)
    g_pad = _round_up(num_graphs, 8)
    vmem_limit = max(32 << 20, min(int(vmem_cap * 0.75), 100 << 20))

    a_p = build_normalized_adjacency(edge_index, edge_attr, n, n_pad, dtype=jnp.bfloat16)
    p_p = build_mean_pool_matrix(batch, num_graphs, n, g_pad, n_pad)

    logp = fused_gcn_forward(a_p, x, weights, biases, p_p, num_classes,
                             tm=tm, vmem_limit_bytes=vmem_limit)
    return logp[:num_graphs]


def reference_forward(params, x, a_hat, pool):
    h = x.astype(jnp.float32)
    for w, b in params[:-1]:
        h = jnp.maximum(a_hat @ (h @ w) + b, 0.0)
    w, b = params[-1]
    h = a_hat @ (h @ w) + b
    return jax.nn.log_softmax(pool @ h, axis=1)


# --------------------------------------------------------------------- main --
def _make_ring_problem(key, num_graphs, nodes_per_graph, in_channels):
    num_nodes = num_graphs * nodes_per_graph
    kx, ke = jax.random.split(key)
    x = jax.random.normal(kx, (num_nodes, in_channels), jnp.float32)
    src_list, dst_list = [], []
    for g in range(num_graphs):
        off = g * nodes_per_graph
        for i in range(nodes_per_graph):
            s = off + i
            t = off + (i + 1) % nodes_per_graph
            src_list += [s, t]
            dst_list += [t, s]
    edge_index = jnp.array([src_list, dst_list], dtype=jnp.int32)
    edge_attr = jax.random.uniform(ke, (edge_index.shape[1],), jnp.float32, 0.5, 1.5)
    batch = jnp.repeat(jnp.arange(num_graphs, dtype=jnp.int32), nodes_per_graph)
    return x, edge_index, edge_attr, batch


def _run_case(key, num_graphs, nodes_per_graph, in_channels, hidden_dim, num_classes,
              num_layers, row_tile, atol):
    kprob, kparam = jax.random.split(key)
    x, edge_index, edge_attr, batch = _make_ring_problem(
        kprob, num_graphs, nodes_per_graph, in_channels)
    params = init_params(kparam, in_channels, hidden_dim, num_classes, num_layers)

    out = gcn_classifier_forward(params, x, edge_index, edge_attr, batch, num_graphs,
                                 row_tile=row_tile)
    out = jax.block_until_ready(out)

    assert out.shape == (num_graphs, num_classes)
    # log_softmax rows should sum (in prob space) to 1.
    assert jnp.allclose(jnp.exp(out).sum(axis=1), 1.0, atol=1e-5)
    # Parity vs. f32 dense reference (kernel uses bf16 MXU operands -> loose tolerance).
    n = x.shape[0]
    a_ref = build_normalized_adjacency(edge_index, edge_attr, n, n, dtype=jnp.float32)
    pool_ref = build_mean_pool_matrix(batch, num_graphs, n, num_graphs, n)
    ref = reference_forward(params, x, a_ref, pool_ref)
    assert jnp.allclose(out, ref, atol=atol), (out, ref)


if __name__ == "__main__":
    key = jax.random.PRNGKey(0)
    k1, k2 = jax.random.split(key)

    # Case 1: tiny problem, A_hat fully VMEM-resident (single row tile).
    _run_case(k1, num_graphs=2, nodes_per_graph=8, in_channels=4, hidden_dim=32,
              num_classes=3, num_layers=3, row_tile=None, atol=0.1)

    # Case 2: same model, more nodes, forced 128-row tiles -> exercises the streamed
    # A_hat row-tile path and the per-tile pooled-logit accumulation.
    _run_case(k2, num_graphs=2, nodes_per_graph=80, in_channels=4, hidden_dim=32,
              num_classes=3, num_layers=3, row_tile=128, atol=0.15)

    print("KERNEL_OK")
</pallas_src>

<mosaic_0001>
module attributes {stable_mosaic.version = 11 : i64} {
  func.func @_fused_gcn_kernel(%arg0: i32, %arg1: i32, %arg2: memref<128x128xbf16, #tpu.memory_space<any>>, %arg3: memref<128x128xbf16, #tpu.memory_space<vmem>>, %arg4: memref<1x128x128xbf16, #tpu.memory_space<vmem>>, %arg5: memref<1x1x128xf32, #tpu.memory_space<vmem>>, %arg6: memref<8x128xf32, #tpu.memory_space<vmem>>, %arg7: memref<8x128xf32, #tpu.memory_space<vmem>>, %arg8: memref<128x128xbf16, #tpu.memory_space<vmem>>, %arg9: memref<128x128xbf16, #tpu.memory_space<vmem>>, %arg10: memref<8x128xf32, #tpu.memory_space<vmem>>, %arg11: memref<!tpu.dma_semaphore, #tpu.memory_space<semaphore_mem>>) attributes {dimension_semantics = [#tpu.dimension_semantics<arbitrary>, #tpu.dimension_semantics<arbitrary>], iteration_bounds = array<i64: 3, 1>, scalar_prefetch = 0 : i64, scratch_operands = 4 : i64, tpu.core_type = #tpu.core_type<tc>, window_params = [{}, {transform_indices = @transform_1, window_bounds = array<i64: 128, 128>}, {transform_indices = @transform_2, window_bounds = array<i64: 1, 128, 128>}, {transform_indices = @transform_3, window_bounds = array<i64: 1, 1, 128>}, {transform_indices = @transform_4, window_bounds = array<i64: 8, 128>}, {pipeline_mode = #tpu.pipeline_mode<synchronous>, transform_indices = @transform_5, window_bounds = array<i64: 8, 128>}]} {
    %c0_i32 = arith.constant 0 : i32
    %0 = arith.cmpi eq, %arg0, %c0_i32 : i32
    %c0_i32_0 = arith.constant 0 : i32
    %1 = arith.cmpi eq, %arg1, %c0_i32_0 : i32
    %2 = arith.andi %0, %1 : i1
    %3 = arith.extui %2 : i1 to i32
    %c0_i32_1 = arith.constant 0 : i32
    %4 = arith.cmpi ne, %3, %c0_i32_1 : i32
    scf.if %4 {
      tpu.enqueue_dma source(%arg2 : memref<128x128xbf16, #tpu.memory_space<any>>) target(%arg8 : memref<128x128xbf16, #tpu.memory_space<vmem>>) target_semaphore(%arg11 : memref<!tpu.dma_semaphore, #tpu.memory_space<semaphore_mem>>)
      tpu.wait_dma2 semaphore(%arg11 : memref<!tpu.dma_semaphore, #tpu.memory_space<semaphore_mem>>) src(%arg2 : memref<128x128xbf16, #tpu.memory_space<any>>) dst(%arg8 : memref<128x128xbf16, #tpu.memory_space<vmem>>)
      %cst = arith.constant 0.000000e+00 : f32
      %38 = vector.broadcast %cst : f32 to vector<8x128xf32>
      %c0 = arith.constant 0 : index
      %c0_19 = arith.constant 0 : index
      %39 = vector.load %arg10[%c0, %c0_19] : memref<8x128xf32, #tpu.memory_space<vmem>>, vector<8x128xf32>
      tpu.vector_store %arg10[%c0, %c0_19], %38 {strides = array<i32>} : memref<8x128xf32, #tpu.memory_space<vmem>>, vector<8x128xf32>,
    } else {
    }
    %c128_i32 = arith.constant 128 : i32
    %5 = arith.muli %arg1, %c128_i32 : i32
    %6 = tpu.assume_multiple %5, 128 : i32
    %c2_i32 = arith.constant 2 : i32
    %c0_i32_2 = arith.constant 0 : i32
    %7 = arith.cmpi eq, %c2_i32, %c0_i32_2 : i32
    %c1_i32 = arith.constant 1 : i32
    %8 = arith.select %7, %c1_i32, %c2_i32 : i32
    %9 = arith.remsi %arg0, %8 : i32
    %c0_i32_3 = arith.constant 0 : i32
    %10 = arith.cmpi ne, %9, %c0_i32_3 : i32
    %c0_i32_4 = arith.constant 0 : i32
    %11 = arith.cmpi slt, %9, %c0_i32_4 : i32
    %c0_i32_5 = arith.constant 0 : i32
    %12 = arith.cmpi slt, %8, %c0_i32_5 : i32
    %13 = arith.xori %11, %12 : i1
    %14 = arith.andi %13, %10 : i1
    %15 = arith.addi %9, %8 : i32
    %16 = arith.select %14, %15, %9 : i32
    %c0_i32_6 = arith.constant 0 : i32
    %17 = arith.cmpi eq, %16, %c0_i32_6 : i32
    %18 = arith.extui %17 : i1 to i32
    %c0_i32_7 = arith.constant 0 : i32
    %19 = arith.cmpi ne, %18, %c0_i32_7 : i32
    scf.if %19 {
      %c0 = arith.constant 0 : index
      %c0_19 = arith.constant 0 : index
      %38 = vector.load %arg3[%c0, %c0_19] : memref<128x128xbf16, #tpu.memory_space<vmem>>, vector<128x128xbf16>
      %c0_20 = arith.constant 0 : index
      %c0_21 = arith.constant 0 : index
      %39 = vector.load %arg8[%c0_20, %c0_21] : memref<128x128xbf16, #tpu.memory_space<vmem>>, vector<128x128xbf16>
      %cst = arith.constant dense<0.000000e+00> : vector<128x128xf32>
      %40 = tpu.matmul %38, %39, %cst {dimension_numbers = #tpu.dot_dimension_numbers<[1], [0], [0], [1], [0, 0, 1, 1], [], []>} : vector<128x128xbf16>, vector<128x128xbf16>, vector<128x128xf32> -> vector<128x128xf32>
      %41 = arith.truncf %40 : vector<128x128xf32> to vector<128x128xbf16>
      %c0_22 = arith.constant 0 : index
      %c0_23 = arith.constant 0 : index
      %c0_24 = arith.constant 0 : index
      %42 = vector.load %arg4[%c0_22, %c0_23, %c0_24] : memref<1x128x128xbf16, #tpu.memory_space<vmem>>, vector<1x128x128xbf16>
      %43 = vector.shape_cast %42 : vector<1x128x128xbf16> to vector<128x128xbf16>
      %cst_25 = arith.constant dense<0.000000e+00> : vector<128x128xf32>
      %44 = tpu.matmul %41, %43, %cst_25 {dimension_numbers = #tpu.dot_dimension_numbers<[1], [0], [0], [1], [0, 0, 1, 1], [], []>} : vector<128x128xbf16>, vector<128x128xbf16>, vector<128x128xf32> -> vector<128x128xf32>
      %c0_26 = arith.constant 0 : index
      %c0_27 = arith.constant 0 : index
      %c0_28 = arith.constant 0 : index
      %45 = vector.load %arg5[%c0_26, %c0_27, %c0_28] : memref<1x1x128xf32, #tpu.memory_space<vmem>>, vector<1x1x128xf32>
      %46 = vector.shape_cast %45 : vector<1x1x128xf32> to vector<1x128xf32>
      %47 = vector.broadcast %46 : vector<1x128xf32> to vector<128x128xf32>
      %48 = arith.addf %44, %47 : vector<128x128xf32>
      %c2_i32_29 = arith.constant 2 : i32
      %49 = arith.cmpi slt, %arg0, %c2_i32_29 : i32
      %50 = arith.extui %49 : i1 to i32
      %c0_i32_30 = arith.constant 0 : i32
      %51 = arith.cmpi ne, %50, %c0_i32_30 : i32
      scf.if %51 {
        %cst_33 = arith.constant 0.000000e+00 : f32
        %55 = vector.broadcast %cst_33 : f32 to vector<128x128xf32>
        %56 = arith.maximumf %48, %55 : vector<128x128xf32>
        %57 = arith.truncf %56 : vector<128x128xf32> to vector<128x128xbf16>
        %58 = arith.index_cast %6 : i32 to index
        %c0_34 = arith.constant 0 : index
        %59 = vector.load %arg9[%58, %c0_34] : memref<128x128xbf16, #tpu.memory_space<vmem>>, vector<128x128xbf16>
        tpu.vector_store %arg9[%58, %c0_34], %57 {strides = array<i32>} : memref<128x128xbf16, #tpu.memory_space<vmem>>, vector<128x128xbf16>,
      } else {
      }
      %c2_i32_31 = arith.constant 2 : i32
      %52 = arith.cmpi eq, %arg0, %c2_i32_31 : i32
      %53 = arith.extui %52 : i1 to i32
      %c0_i32_32 = arith.constant 0 : i32
      %54 = arith.cmpi ne, %53, %c0_i32_32 : i32
      scf.if %54 {
        %c0_33 = arith.constant 0 : index
        %c0_34 = arith.constant 0 : index
        %55 = vector.load %arg10[%c0_33, %c0_34] : memref<8x128xf32, #tpu.memory_space<vmem>>, vector<8x128xf32>
        %c0_35 = arith.constant 0 : index
        %c0_36 = arith.constant 0 : index
        %56 = vector.load %arg6[%c0_35, %c0_36] : memref<8x128xf32, #tpu.memory_space<vmem>>, vector<8x128xf32>
        %cst_37 = arith.constant dense<0.000000e+00> : vector<8x128xf32>
        %57 = tpu.matmul %56, %48, %cst_37 {dimension_numbers = #tpu.dot_dimension_numbers<[1], [0], [0], [1], [0, 0, 1, 1], [], []>} : vector<8x128xf32>, vector<128x128xf32>, vector<8x128xf32> -> vector<8x128xf32>
        %58 = arith.addf %55, %57 : vector<8x128xf32>
        %c0_38 = arith.constant 0 : index
        %c0_39 = arith.constant 0 : index
        %59 = vector.load %arg10[%c0_38, %c0_39] : memref<8x128xf32, #tpu.memory_space<vmem>>, vector<8x128xf32>
        tpu.vector_store %arg10[%c0_38, %c0_39], %58 {strides = array<i32>} : memref<8x128xf32, #tpu.memory_space<vmem>>, vector<8x128xf32>,
      } else {
      }
    } else {
    }
    %c2_i32_8 = arith.constant 2 : i32
    %c0_i32_9 = arith.constant 0 : i32
    %20 = arith.cmpi eq, %c2_i32_8, %c0_i32_9 : i32
    %c1_i32_10 = arith.constant 1 : i32
    %21 = arith.select %20, %c1_i32_10, %c2_i32_8 : i32
    %22 = arith.remsi %arg0, %21 : i32
    %c0_i32_11 = arith.constant 0 : i32
    %23 = arith.cmpi ne, %22, %c0_i32_11 : i32
    %c0_i32_12 = arith.constant 0 : i32
    %24 = arith.cmpi slt, %22, %c0_i32_12 : i32
    %c0_i32_13 = arith.constant 0 : i32
    %25 = arith.cmpi slt, %21, %c0_i32_13 : i32
    %26 = arith.xori %24, %25 : i1
    %27 = arith.andi %26, %23 : i1
    %28 = arith.addi %22, %21 : i32
    %29 = arith.select %27, %28, %22 : i32
    %c1_i32_14 = arith.constant 1 : i32
    %30 = arith.cmpi eq, %29, %c1_i32_14 : i32
    %31 = arith.extui %30 : i1 to i32
    %c0_i32_15 = arith.constant 0 : i32
    %32 = arith.cmpi ne, %31, %c0_i32_15 : i32
    scf.if %32 {
      %c0 = arith.constant 0 : index
      %c0_19 = arith.constant 0 : index
      %38 = vector.load %arg3[%c0, %c0_19] : memref<128x128xbf16, #tpu.memory_space<vmem>>, vector<128x128xbf16>
      %c0_20 = arith.constant 0 : index
      %c0_21 = arith.constant 0 : index
      %39 = vector.load %arg9[%c0_20, %c0_21] : memref<128x128xbf16, #tpu.memory_space<vmem>>, vector<128x128xbf16>
      %cst = arith.constant dense<0.000000e+00> : vector<128x128xf32>
      %40 = tpu.matmul %38, %39, %cst {dimension_numbers = #tpu.dot_dimension_numbers<[1], [0], [0], [1], [0, 0, 1, 1], [], []>} : vector<128x128xbf16>, vector<128x128xbf16>, vector<128x128xf32> -> vector<128x128xf32>
      %41 = arith.truncf %40 : vector<128x128xf32> to vector<128x128xbf16>
      %c0_22 = arith.constant 0 : index
      %c0_23 = arith.constant 0 : index
      %c0_24 = arith.constant 0 : index
      %42 = vector.load %arg4[%c0_22, %c0_23, %c0_24] : memref<1x128x128xbf16, #tpu.memory_space<vmem>>, vector<1x128x128xbf16>
      %43 = vector.shape_cast %42 : vector<1x128x128xbf16> to vector<128x128xbf16>
      %cst_25 = arith.constant dense<0.000000e+00> : vector<128x128xf32>
      %44 = tpu.matmul %41, %43, %cst_25 {dimension_numbers = #tpu.dot_dimension_numbers<[1], [0], [0], [1], [0, 0, 1, 1], [], []>} : vector<128x128xbf16>, vector<128x128xbf16>, vector<128x128xf32> -> vector<128x128xf32>
      %c0_26 = arith.constant 0 : index
      %c0_27 = arith.constant 0 : index
      %c0_28 = arith.constant 0 : index
      %45 = vector.load %arg5[%c0_26, %c0_27, %c0_28] : memref<1x1x128xf32, #tpu.memory_space<vmem>>, vector<1x1x128xf32>
      %46 = vector.shape_cast %45 : vector<1x1x128xf32> to vector<1x128xf32>
      %47 = vector.broadcast %46 : vector<1x128xf32> to vector<128x128xf32>
      %48 = arith.addf %44, %47 : vector<128x128xf32>
      %c2_i32_29 = arith.constant 2 : i32
      %49 = arith.cmpi slt, %arg0, %c2_i32_29 : i32
      %50 = arith.extui %49 : i1 to i32
      %c0_i32_30 = arith.constant 0 : i32
      %51 = arith.cmpi ne, %50, %c0_i32_30 : i32
      scf.if %51 {
        %cst_33 = arith.constant 0.000000e+00 : f32
        %55 = vector.broadcast %cst_33 : f32 to vector<128x128xf32>
        %56 = arith.maximumf %48, %55 : vector<128x128xf32>
        %57 = arith.truncf %56 : vector<128x128xf32> to vector<128x128xbf16>
        %58 = arith.index_cast %6 : i32 to index
        %c0_34 = arith.constant 0 : index
        %59 = vector.load %arg8[%58, %c0_34] : memref<128x128xbf16, #tpu.memory_space<vmem>>, vector<128x128xbf16>
        tpu.vector_store %arg8[%58, %c0_34], %57 {strides = array<i32>} : memref<128x128xbf16, #tpu.memory_space<vmem>>, vector<128x128xbf16>,
      } else {
      }
      %c2_i32_31 = arith.constant 2 : i32
      %52 = arith.cmpi eq, %arg0, %c2_i32_31 : i32
      %53 = arith.extui %52 : i1 to i32
      %c0_i32_32 = arith.constant 0 : i32
      %54 = arith.cmpi ne, %53, %c0_i32_32 : i32
      scf.if %54 {
        %c0_33 = arith.constant 0 : index
        %c0_34 = arith.constant 0 : index
        %55 = vector.load %arg10[%c0_33, %c0_34] : memref<8x128xf32, #tpu.memory_space<vmem>>, vector<8x128xf32>
        %c0_35 = arith.constant 0 : index
        %c0_36 = arith.constant 0 : index
        %56 = vector.load %arg6[%c0_35, %c0_36] : memref<8x128xf32, #tpu.memory_space<vmem>>, vector<8x128xf32>
        %cst_37 = arith.constant dense<0.000000e+00> : vector<8x128xf32>
        %57 = tpu.matmul %56, %48, %cst_37 {dimension_numbers = #tpu.dot_dimension_numbers<[1], [0], [0], [1], [0, 0, 1, 1], [], []>} : vector<8x128xf32>, vector<128x128xf32>, vector<8x128xf32> -> vector<8x128xf32>
        %58 = arith.addf %55, %57 : vector<8x128xf32>
        %c0_38 = arith.constant 0 : index
        %c0_39 = arith.constant 0 : index
        %59 = vector.load %arg10[%c0_38, %c0_39] : memref<8x128xf32, #tpu.memory_space<vmem>>, vector<8x128xf32>
        tpu.vector_store %arg10[%c0_38, %c0_39], %58 {strides = array<i32>} : memref<8x128xf32, #tpu.memory_space<vmem>>, vector<8x128xf32>,
      } else {
      }
    } else {
    }
    %c2_i32_16 = arith.constant 2 : i32
    %33 = arith.cmpi eq, %arg0, %c2_i32_16 : i32
    %c0_i32_17 = arith.constant 0 : i32
    %34 = arith.cmpi eq, %arg1, %c0_i32_17 : i32
    %35 = arith.andi %33, %34 : i1
    %36 = arith.extui %35 : i1 to i32
    %c0_i32_18 = arith.constant 0 : i32
    %37 = arith.cmpi ne, %36, %c0_i32_18 : i32
    scf.if %37 {
      %c0 = arith.constant 0 : index
      %c0_19 = arith.constant 0 : index
      %38 = vector.load %arg10[%c0, %c0_19] : memref<8x128xf32, #tpu.memory_space<vmem>>, vector<8x128xf32>
      %39 = tpu.iota {dimensions = array<i32: 1>} : vector<8x128xi32>
      %c3_i32 = arith.constant 3 : i32
      %40 = vector.broadcast %c3_i32 : i32 to vector<8x128xi32>
      %41 = arith.cmpi slt, %39, %40 : vector<8x128xi32>
      %cst = arith.constant -1.000000e+30 : f32
      %42 = vector.broadcast %cst : f32 to vector<8x128xf32>
      %43 = arith.select %41, %38, %42 : vector<8x128xi1>, vector<8x128xf32>
      %cst_20 = arith.constant dense<0xFF800000> : vector<8xf32>
      %44 = vector.multi_reduction <maximumf>, %43, %cst_20 [1] : vector<8x128xf32> to vector<8xf32>
      %45 = vector.shape_cast %44 : vector<8xf32> to vector<8x1xf32>
      %46 = vector.broadcast %45 : vector<8x1xf32> to vector<8x128xf32>
      %47 = arith.subf %43, %46 : vector<8x128xf32>
      %48 = math.exp %47 : vector<8x128xf32>
      %cst_21 = arith.constant dense<0.000000e+00> : vector<8xf32>
      %49 = vector.multi_reduction <add>, %48, %cst_21 [1] : vector<8x128xf32> to vector<8xf32>
      %50 = vector.shape_cast %49 : vector<8xf32> to vector<8x1xf32>
      %51 = math.log %50 : vector<8x1xf32>
      %52 = vector.broadcast %51 : vector<8x1xf32> to vector<8x128xf32>
      %53 = arith.subf %47, %52 : vector<8x128xf32>
      %c0_22 = arith.constant 0 : index
      %c0_23 = arith.constant 0 : index
      %54 = vector.load %arg7[%c0_22, %c0_23] : memref<8x128xf32, #tpu.memory_space<vmem>>, vector<8x128xf32>
      tpu.vector_store %arg7[%c0_22, %c0_23], %53 {strides = array<i32>} : memref<8x128xf32, #tpu.memory_space<vmem>>, vector<8x128xf32>,
    } else {
    }
    return
  }
  func.func @transform_1(%arg0: i32, %arg1: i32) -> (i32, i32) {
    %c0_i32 = arith.constant 0 : i32
    %c0_i32_0 = arith.constant 0 : i32
    return %arg1, %c0_i32 : i32, i32
  }
  func.func @transform_2(%arg0: i32, %arg1: i32) -> (i32, i32, i32) {
    %c0_i32 = arith.constant 0 : i32
    %c0_i32_0 = arith.constant 0 : i32
    %c0_i32_1 = arith.constant 0 : i32
    return %arg0, %c0_i32, %c0_i32_0 : i32, i32, i32
  }
  func.func @transform_3(%arg0: i32, %arg1: i32) -> (i32, i32, i32) {
    %c0_i32 = arith.constant 0 : i32
    %c0_i32_0 = arith.constant 0 : i32
    %c0_i32_1 = arith.constant 0 : i32
    return %arg0, %c0_i32, %c0_i32_0 : i32, i32, i32
  }
  func.func @transform_4(%arg0: i32, %arg1: i32) -> (i32, i32) {
    %c0_i32 = arith.constant 0 : i32
    %c0_i32_0 = arith.constant 0 : i32
    return %c0_i32, %arg1 : i32, i32
  }
  func.func @transform_5(%arg0: i32, %arg1: i32) -> (i32, i32) {
    %c0_i32 = arith.constant 0 : i32
    %c0_i32_0 = arith.constant 0 : i32
    %c0_i32_1 = arith.constant 0 : i32
    return %c0_i32, %c0_i32_0 : i32, i32
  }
}

</mosaic_0001>

<bundles_post_ra>
// kernel: tpu_custom_call.1
= control target key start
LH: loop header
LB: loop body
LE: loop exit
PB: predicated region body
PF: predicated region fallthrough
CT: control target
= control target key end

     0   :  { %s2262_s0 = inlined_call_operand.hbm [shape: bf16[128,128], index: 0, kind: input, shape index: {}]   ;;  %s2263_s1 = inlined_call_operand.hbm [shape: bf16[128,128], index: 1, kind: input, shape index: {}]   ;;  %s2264_s2 = inlined_call_operand.hbm [shape: bf16[3,128,128], index: 2, kind: input, shape index: {}]   ;;  %s2265_s3 = inlined_call_operand.hbm [shape: f32[3,1,128], index: 3, kind: input, shape index: {}]   ;;  %s2266_s4 = inlined_call_operand.hbm [shape: f32[8,128], index: 4, kind: input, shape index: {}]   ;;  %s2267_s5 = inlined_call_operand.hbm [shape: f32[8,128], index: 5, kind: output, shape index: {}]  }
   0x1   :  { %2270 = sst [smem:[#allocation25_spill]] %s2263_s1 }
   0x2   :  { %2271 = sst [smem:[#allocation26_spill]] %s2264_s2 }
   0x3   :  { %10 = vsyncpa [#allocation7], 0 }
   0x4   :  { %11 = vsyncpa [#allocation10], 0 }
   0x5   :  { %13 = vsyncpa [#allocation10 + $0x1], 0 }
   0x6   :  { %14 = vsyncpa [#allocation13], 0 }
   0x7   :  { %15 = vsyncpa [#allocation8], 0  ;;  %s2027_s18 = smov 0   ;;  %s2029_s19 = smov 0  }
   0x8   :  { %s2031_s20 = smov 0   ;;  %s2033_s21 = smov 0  }
   0x9   :  { %s2035_s22 = smov 0   ;;  %s2037_s23 = smov 0  }
   0xa LB: > { %s33_s24 = sadd.s32 1, %s1984_s22  ;;  %s66_s25 = sadd.s32 1, %s1976_s20  ;;  %s1988_s23 = sphi %s2037_s23, %s21_s23   ;;  %s1984_s22 = sphi %s2035_s22, %s2285_s22   ;;  %s1980_s21 = sphi %s2033_s21, %s2284_s21   ;;  %s1976_s20 = sphi %s2031_s20, %s2283_s20   ;;  %s1972_s19 = sphi %s2029_s19, %s2282_s19   ;;  %s1968_s18 = sphi %s2027_s18, %s2281_s18  }
   0xb   : > { %p35_p0 = scmp.ge.s32.totalorder %s33_s24, 3  ;;  %p73_p1 = scmp.ne.s32.totalorder %s1976_s20, %s1972_s19 }
   0xc   : > { %p74_p2 = scmp.eq.s32.totalorder %s1988_s23, 0  ;;  %p1686_p5 = scmp.lt.s32.totalorder %s1988_s23, 3 }
   0xd   : > { %s2287_s24 = smov (%p35_p0, %s33_s24), 0  ;;  %s207_s28 = sand.u32 1, %s1988_s23  }
   0xe   : > { %2272 = sst [smem:[#allocation24_spill]] %s2287_s24  ;;  %p2064_p3 = por %p74_p2, %p73_p1 }
   0xf   : > { %s63_s27 = ssub.s32 %s1984_s22, %s2287_s24  ;;  %s2268_s29 = sand.u32 1, %s1976_s20  }
  0x10   : > { %p64_p4 = scmp.eq.s32.totalorder %s63_s27, 0  ;;  %s1262_s6 = sshll.u32 %s2268_s29, 6 }
  0x11   : > { %s1477_s7 = sshll.u32 %s1984_s22, 6  ;;  %s2274_s2 = sld [smem:[#allocation26_spill]] }
  0x12   : > { %s2074_s30 = scalar_select %p64_p4, %s1976_s20, %s66_s25  }
  0x13   : > { %s211_s11 = scalar_lea.vmem [#allocation9], %s1262_s6  ;;  %p2084_p6 = pnand %p1686_p5, %p2064_p3 }
  0x14   : > { %s219_s12 = sshll.u32 %s211_s11, 4  ;;  %s2088_s15 = scalar_lea.sflag [#allocation10], %s207_s28  ;;  %s220_s12 = int_to_ptr.vmem [resolvable:$true] %s219_s12 }
  0x15   : > { %s1990_s16 = smov 64   ;;  %s1991_s17 = smov 4  }
  0x16   : > { %s2094_s25 = sadd.s32 4294967295, %s1988_s23   ;;  %p79_p7 = scmp.ne.s32.totalorder %s1972_s19, %s1968_s18 }
  0x17   : > { %s216_s10 = scalar_lea.hbm %s2274_s2, %s1477_s7  ;;  %p80_p8 = scmp.eq.s32.totalorder %s2094_s25, 0 }
  0x18   : > { %s217_s13 = sshll.u32 %s216_s10, 4  ;;  %p1258_p9 = scmp.ge.s32.totalorder %s1988_s23, 1  ;;  %s218_s13 = int_to_ptr.hbm [resolvable:$true] %s217_s13 }
  0x19   : > { %1680 = dma.hbm_to_vmem [thread:$0]  (!%p2084_p6), %s218_s13, 1024, %s220_s12, %s2088_s15, %s1990_s16, %s1990_s16, %s1991_s17  }
  0x1a   : > { %p163_p10 = scmp.lt.s32.totalorder %s1988_s23, 4  ;;  %p2103_p11 = por %p80_p8, %p79_p7 }
  0x1b   : > { %s2278_s1 = sld [smem:[#allocation25_spill]]  ;;  %s1992_s18 = smov [#allocation6]  }
  0x1c   : > { %p2107_p12 = pnand %p1258_p9, %p163_p10  ;;  %s179_s8 = sshll.u32 %s1992_s18, 4  ;;  %s180_s8 = int_to_ptr.vmem [resolvable:$true] %s179_s8 }
  0x1d   : > { %s194_s11 = sshll.u32 %s2266_s4, 4  ;;  %s1993_s12 = smov [#allocation12]   ;;  %s195_s11 = int_to_ptr.hbm [resolvable:$true] %s194_s11 }
  0x1e   : > { %p1670_p13 = pneg %p2107_p12  ;;  %s196_s13 = sshll.u32 %s1993_s12, 4  ;;  %s197_s13 = int_to_ptr.vmem [resolvable:$true] %s196_s13 }
  0x1f   : > { %s235_s29 = scalar_lea.hbm %s2265_s3, %s1984_s22 }
  0x20   : > { %p1671_p0 = pnand %p1670_p13, %p80_p8  ;;  %s237_s18 = sshll.u32 %s235_s29, 4  ;;  %s238_s18 = int_to_ptr.hbm [resolvable:$true] %s237_s18 }
  0x21   : > { %s177_s7 = sshll.u32 %s2278_s1, 4  ;;  %s2279_s1 = sand.u32 1, %s1976_s20   ;;  %s178_s7 = int_to_ptr.hbm [resolvable:$true] %s177_s7 }
  0x22   : > { %1673 = dma.hbm_to_vmem [thread:$0]  (!%p1671_p0), %s178_s7, 1024, %s180_s8, [#allocation7], %s1990_s16, %s1990_s16, %s1991_s17  }
  0x23   : > { %1676 = dma.hbm_to_vmem [thread:$0]  (!%p1671_p0), %s195_s11, 128, %s197_s13, [#allocation13]  }
  0x24   : > { %s232_s2 = scalar_lea.vmem [#allocation11], %s2279_s1  ;;  %248 = sbr.rel (%p2107_p12) target bundleno = 1433 (0x599), region = 36 }
  0x25   : > { %s239_s24 = sshll.u32 %s232_s2, 4  ;;  %s240_s24 = int_to_ptr.vmem [resolvable:$true] %s239_s24 }
  0x26   : > { %1683 = dma.hbm_to_vmem [thread:$0]  (!%p2084_p6), %s238_s18, 16, %s240_s24, %s2088_s15  }
  0x29   : > { %1949 = dma.done.wait (%p80_p8), [#allocation7], 1024  }
  0x2a   : > { %1951 = vsyncadd (%p80_p8), [#allocation7], 4294966272  ;;  %s255_s29 = sand.u32 1, %s2094_s25   ;;  %s257_s16 = sand.u32 1, %s1972_s19  }
  0x2b   : > { %s1267_s1 = sshll.u32 %s257_s16, 6  ;;  %s256_s2 = scalar_lea.sflag [#allocation10], %s255_s29 }
  0x2c   : > { %s2138_s17 = scalar_lea.vmem [#allocation9], %s1267_s1 }
  0x2d   : > { %1953 = dma.done.wait (%p2103_p11), %s256_s2, 1040  }
  0x2e   : > { %1955 = vsyncadd (%p2103_p11), %s256_s2, 4294966256  ;;  %s2144_s24 = scalar_lea.vmem [#allocation11], %s257_s16 }
  0x2f   : > { %1957 = dma.done.wait (%p80_p8), [#allocation13], 128  }
  0x30   : > { %1959 = vsyncadd (%p80_p8), [#allocation13], 4294967168  ;;  %p299_p1 = scmp.eq.s32.totalorder %s1980_s21, 0 }
  0x31   : > { %s312_s27 = sshll.u32 (%p299_p1), %s2262_s0, 4  ;;  %s1994_s7 = smov (%p299_p1), [#allocation2]   ;;  %s313_s27 = int_to_ptr.hbm [resolvable:$true] %s312_s27 }
  0x32   : > { %304 = sbr.rel (!%p299_p1) target bundleno = 58 (0x3a), region = 56  ;;  %s314_s8 = sshll.u32 (%p299_p1), %s1994_s7, 4  ;;  %s315_s8 = int_to_ptr.vmem [resolvable:$true] %s314_s8 }
  0x33   : > { %317 = dma.hbm_to_vmem [thread:$0]  (%p299_p1), %s313_s27, 1024, %s315_s8, [#allocation5] }
  0x37   : > { %1960 = dma.done.wait [#allocation5], 1024 }
  0x38   : > { %1961 = vsyncadd [#allocation5], 4294966272  ;;  %v1995_v0 = vmov 0.0  }
  0x39   : > { %322 = vst [vmem:[#allocation4] sm:$0xff] %v1995_v0 }
  0x3a PF: > { %p324_p2 = scmp.lt.s32.totalorder %s1980_s21, 0  ;;  %s325_s26 = ssub.s32 0, %s1980_s21 }
  0x3b   : > { %s1270_s9 = smin.u32 %s1980_s21, %s325_s26 }
  0x3c   : > { %s327_s10 = sand.u32 1, %s1270_s9  }
  0x3d   : > { %s328_s11 = ssub.s32 0, %s327_s10 }
  0x3e   : > { %s2289_s11 = smov (!%p324_p2, %s328_s11), %s327_s10 }
  0x3f   : > { %p1272_p3 = scmp.lt.s32.totalorder %s2289_s11, 0  ;;  %s334_s12 = sadd.s32 2, %s2289_s11 }
  0x41   : > { %s2291_s12 = smov (!%p1272_p3, %s334_s12), %s2289_s11 }
  0x42   : > { %p1273_p4 = scmp.ne.s32.totalorder %s2291_s12, 0 }
  0x43   : > { %p1370_p5 = scmp.ge.s32.totalorder (!%p1273_p4), %s1980_s21, 2 }
  0x44   : > { %339 = sbr.rel (%p1273_p4) target bundleno = 615 (0x267), region = 64 }
  0x49   : > { %v1494_v1 = vld [vmem:[#allocation2 + $0x38] sm:$0xff]  ;;  %v1493_v2 = vld [vmem:[#allocation2 + $0x30] sm:$0xff]  ;;  %v1492_v3 = vld [vmem:[#allocation2 + $0x28] sm:$0xff] }
  0x4a   : > { %468 = vmatpush.bf16.msra.mxu0 %v1494_v1  ;;  %1622 = vmatpush.bf16.msra.mxu2 %v1494_v1  ;;  %v1491_v4 = vld [vmem:[#allocation2 + $0x20] sm:$0xff]  ;;  %v1490_v5 = vld [vmem:[#allocation2 + $0x18] sm:$0xff]  ;;  %v1489_v6 = vld [vmem:[#allocation2 + $0x10] sm:$0xff] }
  0x4b   : > { %v1488_v7 = vld [vmem:[#allocation2 + $0x8] sm:$0xff]  ;;  %v1487_v8 = vld [vmem:[#allocation2] sm:$0xff]  ;;  %v1480_v11 = vld [vmem:[#allocation6 + $0x8] sm:$0xff] }
  0x4c   : > { %v1479_v9 = vld [vmem:[#allocation6] sm:$0xff]  ;;  %v1484_v12 = vld [vmem:[#allocation6 + $0x28] sm:$0xff]  ;;  %v1502_v13 = vld [vmem:[%s2138_s17 + $0x38] sm:$0xff] }
  0x4d   : > { %v1483_v10 = vld [vmem:[#allocation6 + $0x20] sm:$0xff]  ;;  %593 = vmatpush.bf16.msra.mxu1 %v1502_v13  ;;  %v1501_v14 = vld [vmem:[%s2138_s17 + $0x30] sm:$0xff]  ;;  %1630 = vmatpush.bf16.msra.mxu3 %v1502_v13  ;;  %v1500_v15 = vld [vmem:[%s2138_s17 + $0x28] sm:$0xff] }
  0x4e   : > { %469 = vmatpush.bf16.msra.mxu0 %v1493_v2  ;;  %1623 = vmatpush.bf16.msra.mxu2 %v1493_v2  ;;  %v1499_v16 = vld [vmem:[%s2138_s17 + $0x20] sm:$0xff]  ;;  %v1481_v17 = vld [vmem:[#allocation6 + $0x10] sm:$0xff]  ;;  %v1498_v19 = vld [vmem:[%s2138_s17 + $0x18] sm:$0xff] }
  0x4f   : > { %v1485_v18 = vld [vmem:[#allocation6 + $0x30] sm:$0xff]  ;;  %v1482_v20 = vld [vmem:[#allocation6 + $0x18] sm:$0xff]  ;;  %v1496_v23 = vld [vmem:[%s2138_s17 + $0x8] sm:$0xff] }
  0x50   : > { %v1486_v21 = vld [vmem:[#allocation6 + $0x38] sm:$0xff]  ;;  %v1497_v22 = vld [vmem:[%s2138_s17 + $0x10] sm:$0xff]  ;;  %v1495_v24 = vld [vmem:[%s2138_s17] sm:$0xff] }
  0x51   : > { %594 = vmatpush.bf16.msra.mxu1 %v1501_v14  ;;  %1631 = vmatpush.bf16.msra.mxu3 %v1501_v14  ;;  %v1746_v49 = vld [vmem:[%s2144_s24] ss:$0 sm:$0xff] }
  0x52   : > { %470 = vmatpush.bf16.msra.mxu0 %v1492_v3  ;;  %1624 = vmatpush.bf16.msra.mxu2 %v1492_v3 }
  0x55   : > { %595 = vmatpush.bf16.msra.mxu1 %v1500_v15  ;;  %1632 = vmatpush.bf16.msra.mxu3 %v1500_v15 }
  0x56   : > { %471 = vmatpush.bf16.msra.mxu0 %v1491_v4  ;;  %1625 = vmatpush.bf16.msra.mxu2 %v1491_v4 }
  0x59   : > { %596 = vmatpush.bf16.msra.mxu1 %v1499_v16  ;;  %1633 = vmatpush.bf16.msra.mxu3 %v1499_v16 }
  0x5a   : > { %472 = vmatpush.bf16.msra.mxu0 %v1490_v5  ;;  %1626 = vmatpush.bf16.msra.mxu2 %v1490_v5 }
  0x5d   : > { %597 = vmatpush.bf16.msra.mxu1 %v1498_v19  ;;  %1634 = vmatpush.bf16.msra.mxu3 %v1498_v19 }
  0x5e   : > { %473 = vmatpush.bf16.msra.mxu0 %v1489_v6  ;;  %1627 = vmatpush.bf16.msra.mxu2 %v1489_v6 }
  0x61   : > { %598 = vmatpush.bf16.msra.mxu1 %v1497_v22  ;;  %1635 = vmatpush.bf16.msra.mxu3 %v1497_v22 }
  0x62   : > { %474 = vmatpush.bf16.msra.mxu0 %v1488_v7  ;;  %1628 = vmatpush.bf16.msra.mxu2 %v1488_v7 }
  0x65   : > { %599 = vmatpush.bf16.msra.mxu1 %v1496_v23  ;;  %1636 = vmatpush.bf16.msra.mxu3 %v1496_v23 }
  0x66   : > { %475 = vmatpush.bf16.msra.mxu0 %v1487_v8  ;;  %1629 = vmatpush.bf16.msra.mxu2 %v1487_v8 }
  0x69   : > { %476 = vmatmul.bf16.vlgmr.msra.gmra.mxu0 %v1479_v9  ;;  %496 = vmatmul.bf16.vlgmr.msra.gmra.mxu2 %v1483_v10 }
  0x6a   : > { %600 = vmatpush.bf16.msra.mxu1 %v1495_v24  ;;  %1637 = vmatpush.bf16.msra.mxu3 %v1495_v24 }
  0x79   : > { %481 = vmatmul.bf16.gmra.mxu0 %v1480_v11  ;;  %501 = vmatmul.bf16.gmra.mxu2 %v1484_v12 }
  0x89   : > { %486 = vmatmul.bf16.gmra.mxu0 %v1481_v17  ;;  %506 = vmatmul.bf16.gmra.mxu2 %v1485_v18 }
  0x99   : > { %491 = vmatmul.bf16.gmra.mxu0 %v1482_v20  ;;  %511 = vmatmul.bf16.gmra.mxu2 %v1486_v21 }
  0xe6   : > { %v477_v25 = vpop.f32.mrf.mxu0 }
  0xec   : > { %v497_v26 = vpop.f32.mrf.mxu2 }
  0xee   : > { %v479_v27 = vpop.f32.mrf.mxu0 }
  0xef   : > { %v517_v28 = vpack.c.bf16 %v479_v27, %v477_v25 }
  0xf1   : > { %601 = vmatmul.bf16.vlgmr.msra.gmra.mxu1 %v517_v28 }
  0xf4   : > { %v499_v29 = vpop.f32.mrf.mxu2 }
  0xf5   : > { %v521_v30 = vpack.c.bf16 %v499_v29, %v497_v26 }
  0xf6   : > { %v482_v31 = vpop.f32.mrf.mxu0 }
  0xf7   : > { %621 = vmatmul.bf16.vlgmr.msra.gmra.mxu3 %v521_v30 }
  0xfc   : > { %v502_v32 = vpop.f32.mrf.mxu2 }
  0xfe   : > { %v484_v33 = vpop.f32.mrf.mxu0 }
  0xff   : > { %v518_v34 = vpack.c.bf16 %v484_v33, %v482_v31 }
 0x101   : > { %606 = vmatmul.bf16.gmra.mxu1 %v518_v34 }
 0x104   : > { %v504_v35 = vpop.f32.mrf.mxu2 }
 0x105   : > { %v522_v36 = vpack.c.bf16 %v504_v35, %v502_v32 }
 0x106   : > { %v487_v37 = vpop.f32.mrf.mxu0 }
 0x107   : > { %626 = vmatmul.bf16.gmra.mxu3 %v522_v36 }
 0x10c   : > { %v507_v38 = vpop.f32.mrf.mxu2 }
 0x10e   : > { %v489_v39 = vpop.f32.mrf.mxu0 }
 0x10f   : > { %v519_v40 = vpack.c.bf16 %v489_v39, %v487_v37 }
 0x111   : > { %611 = vmatmul.bf16.gmra.mxu1 %v519_v40 }
 0x114   : > { %v509_v41 = vpop.f32.mrf.mxu2 }
 0x115   : > { %v523_v42 = vpack.c.bf16 %v509_v41, %v507_v38 }
 0x116   : > { %v492_v43 = vpop.f32.mrf.mxu0 }
 0x117   : > { %631 = vmatmul.bf16.gmra.mxu3 %v523_v42 }
 0x11c   : > { %v512_v44 = vpop.f32.mrf.mxu2 }
 0x11e   : > { %v494_v45 = vpop.f32.mrf.mxu0 }
 0x11f   : > { %v520_v46 = vpack.c.bf16 %v494_v45, %v492_v43 }
 0x121   : > { %616 = vmatmul.bf16.gmra.mxu1 %v520_v46 }
 0x124   : > { %v514_v47 = vpop.f32.mrf.mxu2 }
 0x125   : > { %v524_v48 = vpack.c.bf16 %v514_v47, %v512_v44 }
 0x127   : > { %636 = vmatmul.bf16.gmra.mxu3 %v524_v48 }
 0x16e   : > { %v602_v50 = vpop.f32.mrf.mxu1 }
 0x16f   : > { %v2169_v51 = vadd.f32 %v1746_v49, %v602_v50 }
 0x176   : > { %v604_v52 = vpop.f32.mrf.mxu1 }
 0x177   : > { %v2171_v53 = vadd.f32 %v1746_v49, %v604_v52 }
 0x17a   : > { %v622_v54 = vpop.f32.mrf.mxu3 }
 0x17b   : > { %v2173_v55 = vadd.f32 %v1746_v49, %v622_v54 }
 0x17e   : > { %v607_v56 = vpop.f32.mrf.mxu1 }
 0x17f   : > { %v2175_v57 = vadd.f32 %v1746_v49, %v607_v56 }
 0x182   : > { %v624_v58 = vpop.f32.mrf.mxu3 }
 0x183   : > { %v2177_v59 = vadd.f32 %v1746_v49, %v624_v58 }
 0x186   : > { %v609_v60 = vpop.f32.mrf.mxu1 }
 0x187   : > { %v2179_v61 = vadd.f32 %v1746_v49, %v609_v60 }
 0x18a   : > { %v627_v62 = vpop.f32.mrf.mxu3 }
 0x18b   : > { %v628_v63 = vadd.f32 %v1746_v49, %v627_v62 }
 0x18e   : > { %v612_v0 = vpop.f32.mrf.mxu1 }
 0x18f   : > { %v2181_v1 = vadd.f32 %v1746_v49, %v612_v0 }
 0x192   : > { %v629_v2 = vpop.f32.mrf.mxu3 }
 0x193   : > { %v630_v3 = vadd.f32 %v1746_v49, %v629_v2 }
 0x196   : > { %v614_v4 = vpop.f32.mrf.mxu1 }
 0x197   : > { %v615_v5 = vadd.f32 %v1746_v49, %v614_v4 }
 0x19a   : > { %v632_v6 = vpop.f32.mrf.mxu3 }
 0x19b   : > { %v633_v7 = vadd.f32 %v1746_v49, %v632_v6 }
 0x19e   : > { %v617_v8 = vpop.f32.mrf.mxu1 }
 0x19f   : > { %v618_v9 = vadd.f32 %v1746_v49, %v617_v8 }
 0x1a2   : > { %v634_v10 = vpop.f32.mrf.mxu3 }
 0x1a3   : > { %v635_v11 = vadd.f32 %v1746_v49, %v634_v10 }
 0x1a6   : > { %v619_v12 = vpop.f32.mrf.mxu1 }
 0x1a7   : > { %v620_v13 = vadd.f32 %v1746_v49, %v619_v12 }
 0x1aa   : > { %v637_v14 = vpop.f32.mrf.mxu3 }
 0x1ab   : > { %v638_v15 = vadd.f32 %v1746_v49, %v637_v14 }
 0x1af   : > { %645 = sbr.rel (%p1370_p5) target bundleno = 448 (0x1c0), region = 68 }
 0x1b2   : > { %v639_v16 = vpop.f32.mrf.mxu3 }
 0x1b3   : > { %v640_v17 = vadd.f32 %v1746_v49, %v639_v16 }
 0x1b4   : > { %v646_v18 = vmax.f32 %v2169_v51, 0.0  ;;  %v647_v19 = vmax.f32 %v2171_v53, 0.0  ;;  %v648_v20 = vmax.f32 %v2175_v57, 0.0  ;;  %v649_v21 = vmax.f32 %v2179_v61, 0.0 }
 0x1b5   : > { %v650_v22 = vmax.f32 %v2181_v1, 0.0  ;;  %v651_v23 = vmax.f32 %v615_v5, 0.0  ;;  %v652_v24 = vmax.f32 %v618_v9, 0.0  ;;  %v653_v25 = vmax.f32 %v620_v13, 0.0 }
 0x1b6   : > { %v1531_v26 = vpack.c.bf16 %v647_v19, %v646_v18  ;;  %v1536_v27 = vpack.c.bf16 %v649_v21, %v648_v20  ;;  %v654_v28 = vmax.f32 %v2173_v55, 0.0  ;;  %v655_v29 = vmax.f32 %v2177_v59, 0.0 }
 0x1b7   : > { %v1541_v30 = vpack.c.bf16 %v651_v23, %v650_v22  ;;  %v1546_v31 = vpack.c.bf16 %v653_v25, %v652_v24  ;;  %v656_v32 = vmax.f32 %v628_v63, 0.0  ;;  %v657_v33 = vmax.f32 %v630_v3, 0.0 }
 0x1b8   : > { %1532 = vst [vmem:[#allocation3 + $0x30] sm:$0xff] %v1531_v26   ;;  %v1551_v34 = vpack.c.bf16 %v655_v29, %v654_v28  ;;  %v658_v35 = vmax.f32 %v633_v7, 0.0  ;;  %v659_v36 = vmax.f32 %v635_v11, 0.0  ;;  %v660_v37 = vmax.f32 %v638_v15, 0.0 }
 0x1b9   : > { %1608 = vst [vmem:[#allocation3] sm:$0xff] %v1536_v27   ;;  %v1556_v38 = vpack.c.bf16 %v657_v33, %v656_v32  ;;  %v661_v39 = vmax.f32 %v640_v17, 0.0 }
 0x1ba   : > { %1609 = vst [vmem:[#allocation3 + $0x18] sm:$0xff] %v1541_v30   ;;  %v1561_v40 = vpack.c.bf16 %v659_v36, %v658_v35 }
 0x1bb   : > { %1610 = vst [vmem:[#allocation3 + $0x10] sm:$0xff] %v1546_v31   ;;  %v1566_v41 = vpack.c.bf16 %v661_v39, %v660_v37 }
 0x1bc   : > { %1611 = vst [vmem:[#allocation3 + $0x8] sm:$0xff] %v1551_v34  }
 0x1bd   : > { %1612 = vst [vmem:[#allocation3 + $0x20] sm:$0xff] %v1556_v38  }
 0x1be   : > { %1613 = vst [vmem:[#allocation3 + $0x28] sm:$0xff] %v1561_v40  }
 0x1bf   : > { %1614 = vst [vmem:[#allocation3 + $0x38] sm:$0xff] %v1566_v41  }
 0x1c0 PF: > { %p1371_p6 = scmp.ne.s32.totalorder %s1980_s21, 2 }
 0x1c2   : > { %701 = sbr.rel (%p1371_p6) target bundleno = 615 (0x267), region = 72 }
 0x1c7   : > { %704 = vmatpush.msra.mxu0 %v640_v17  ;;  %v703_v42 = vld [vmem:[#allocation12] sm:$0xff]  ;;  %v702_v43 = vld [vmem:[#allocation4] sm:$0xff] }
 0x1c9   : > { %705 = vmatpush.msra.mxu0 %v638_v15 }
 0x1cb   : > { %706 = vmatpush.msra.mxu0 %v635_v11 }
 0x1cd   : > { %707 = vmatpush.msra.mxu0 %v633_v7 }
 0x1cf   : > { %708 = vmatpush.msra.mxu0 %v630_v3 }
 0x1d1   : > { %709 = vmatpush.msra.mxu0 %v628_v63 }
 0x1d3   : > { %710 = vmatpush.msra.mxu0 %v2177_v59 }
 0x1d5   : > { %711 = vmatpush.msra.mxu0 %v2173_v55 }
 0x1d7   : > { %712 = vmatpush.msra.mxu0 %v620_v13 }
 0x1d9   : > { %713 = vmatpush.msra.mxu0 %v618_v9 }
 0x1db   : > { %714 = vmatpush.msra.mxu0 %v615_v5 }
 0x1dd   : > { %715 = vmatpush.msra.mxu0 %v2181_v1 }
 0x1df   : > { %716 = vmatpush.msra.mxu0 %v2179_v61 }
 0x1e1   : > { %717 = vmatpush.msra.mxu0 %v2175_v57 }
 0x1e3   : > { %718 = vmatpush.msra.mxu0 %v2171_v53 }
 0x1e5   : > { %719 = vmatpush.msra.mxu0 %v2169_v51 }
 0x1e6   : > { %720 = vmatmul.f32.vlgmr.msra.gmra.mxu0 %v703_v42 }
 0x263   : > { %v721_v44 = vpop.f32.mrf.mxu0 }
 0x264   : > { %v724_v45 = vadd.f32 %v721_v44, %v702_v43 }
 0x266   : > { %725 = vst [vmem:[#allocation4] sm:$0xff] %v724_v45 }
 0x267 PF: > { %p1372_p7 = scmp.ne.s32.totalorder %s2291_s12, 1 }
 0x268   : > { %p1469_p8 = scmp.ge.s32.totalorder (!%p1372_p7), %s1980_s21, 2 }
 0x269   : > { %729 = sbr.rel (%p1372_p7) target bundleno = 1164 (0x48c), region = 76 }
 0x26e   : > { %v1518_v46 = vld [vmem:[#allocation3 + $0x38] sm:$0xff]  ;;  %v1517_v47 = vld [vmem:[#allocation3 + $0x28] sm:$0xff]  ;;  %v1516_v48 = vld [vmem:[#allocation3 + $0x20] sm:$0xff] }
 0x26f   : > { %858 = vmatpush.bf16.msra.mxu0 %v1518_v46  ;;  %1638 = vmatpush.bf16.msra.mxu2 %v1518_v46  ;;  %v1515_v49 = vld [vmem:[#allocation3 + $0x8] sm:$0xff]  ;;  %v1514_v50 = vld [vmem:[#allocation3 + $0x10] sm:$0xff]  ;;  %v1513_v51 = vld [vmem:[#allocation3 + $0x18] sm:$0xff] }
 0x270   : > { %v1512_v52 = vld [vmem:[#allocation3] sm:$0xff]  ;;  %v1511_v53 = vld [vmem:[#allocation3 + $0x30] sm:$0xff]  ;;  %v1503_v54 = vld [vmem:[#allocation6] sm:$0xff] }
 0x271   : > { %v1507_v55 = vld [vmem:[#allocation6 + $0x20] sm:$0xff]  ;;  %v1504_v56 = vld [vmem:[#allocation6 + $0x8] sm:$0xff]  ;;  %v1526_v58 = vld [vmem:[%s2138_s17 + $0x38] sm:$0xff] }
 0x272   : > { %v1508_v57 = vld [vmem:[#allocation6 + $0x28] sm:$0xff]  ;;  %983 = vmatpush.bf16.msra.mxu1 %v1526_v58  ;;  %v1525_v59 = vld [vmem:[%s2138_s17 + $0x30] sm:$0xff]  ;;  %1646 = vmatpush.bf16.msra.mxu3 %v1526_v58  ;;  %v1523_v61 = vld [vmem:[%s2138_s17 + $0x20] sm:$0xff] }
 0x273   : > { %859 = vmatpush.bf16.msra.mxu0 %v1517_v47  ;;  %1639 = vmatpush.bf16.msra.mxu2 %v1517_v47  ;;  %v1524_v60 = vld [vmem:[%s2138_s17 + $0x28] sm:$0xff]  ;;  %v1505_v62 = vld [vmem:[#allocation6 + $0x10] sm:$0xff]  ;;  %v1522_v0 = vld [vmem:[%s2138_s17 + $0x18] sm:$0xff] }
 0x274   : > { %v1509_v63 = vld [vmem:[#allocation6 + $0x30] sm:$0xff]  ;;  %v1506_v1 = vld [vmem:[#allocation6 + $0x18] sm:$0xff]  ;;  %v1520_v4 = vld [vmem:[%s2138_s17 + $0x8] sm:$0xff] }
 0x275   : > { %v1510_v2 = vld [vmem:[#allocation6 + $0x38] sm:$0xff]  ;;  %v1521_v3 = vld [vmem:[%s2138_s17 + $0x10] sm:$0xff]  ;;  %v1519_v5 = vld [vmem:[%s2138_s17] sm:$0xff] }
 0x276   : > { %984 = vmatpush.bf16.msra.mxu1 %v1525_v59  ;;  %1647 = vmatpush.bf16.msra.mxu3 %v1525_v59  ;;  %v1747_v30 = vld [vmem:[%s2144_s24] ss:$0 sm:$0xff] }
 0x277   : > { %860 = vmatpush.bf16.msra.mxu0 %v1516_v48  ;;  %1640 = vmatpush.bf16.msra.mxu2 %v1516_v48 }
 0x27a   : > { %985 = vmatpush.bf16.msra.mxu1 %v1524_v60  ;;  %1648 = vmatpush.bf16.msra.mxu3 %v1524_v60 }
 0x27b   : > { %861 = vmatpush.bf16.msra.mxu0 %v1515_v49  ;;  %1641 = vmatpush.bf16.msra.mxu2 %v1515_v49 }
 0x27e   : > { %986 = vmatpush.bf16.msra.mxu1 %v1523_v61  ;;  %1649 = vmatpush.bf16.msra.mxu3 %v1523_v61 }
 0x27f   : > { %862 = vmatpush.bf16.msra.mxu0 %v1514_v50  ;;  %1642 = vmatpush.bf16.msra.mxu2 %v1514_v50 }
 0x282   : > { %987 = vmatpush.bf16.msra.mxu1 %v1522_v0  ;;  %1650 = vmatpush.bf16.msra.mxu3 %v1522_v0 }
 0x283   : > { %863 = vmatpush.bf16.msra.mxu0 %v1513_v51  ;;  %1643 = vmatpush.bf16.msra.mxu2 %v1513_v51 }
 0x286   : > { %988 = vmatpush.bf16.msra.mxu1 %v1521_v3  ;;  %1651 = vmatpush.bf16.msra.mxu3 %v1521_v3 }
 0x287   : > { %864 = vmatpush.bf16.msra.mxu0 %v1512_v52  ;;  %1644 = vmatpush.bf16.msra.mxu2 %v1512_v52 }
 0x28a   : > { %989 = vmatpush.bf16.msra.mxu1 %v1520_v4  ;;  %1652 = vmatpush.bf16.msra.mxu3 %v1520_v4 }
 0x28b   : > { %865 = vmatpush.bf16.msra.mxu0 %v1511_v53  ;;  %1645 = vmatpush.bf16.msra.mxu2 %v1511_v53 }
 0x28e   : > { %866 = vmatmul.bf16.vlgmr.msra.gmra.mxu0 %v1503_v54  ;;  %886 = vmatmul.bf16.vlgmr.msra.gmra.mxu2 %v1507_v55 }
 0x28f   : > { %990 = vmatpush.bf16.msra.mxu1 %v1519_v5  ;;  %1653 = vmatpush.bf16.msra.mxu3 %v1519_v5 }
 0x29e   : > { %871 = vmatmul.bf16.gmra.mxu0 %v1504_v56  ;;  %891 = vmatmul.bf16.gmra.mxu2 %v1508_v57 }
 0x2ae   : > { %876 = vmatmul.bf16.gmra.mxu0 %v1505_v62  ;;  %896 = vmatmul.bf16.gmra.mxu2 %v1509_v63 }
 0x2be   : > { %881 = vmatmul.bf16.gmra.mxu0 %v1506_v1  ;;  %901 = vmatmul.bf16.gmra.mxu2 %v1510_v2 }
 0x30b   : > { %v867_v6 = vpop.f32.mrf.mxu0 }
 0x311   : > { %v887_v7 = vpop.f32.mrf.mxu2 }
 0x313   : > { %v869_v8 = vpop.f32.mrf.mxu0 }
 0x314   : > { %v907_v9 = vpack.c.bf16 %v869_v8, %v867_v6 }
 0x316   : > { %991 = vmatmul.bf16.vlgmr.msra.gmra.mxu1 %v907_v9 }
 0x319   : > { %v889_v10 = vpop.f32.mrf.mxu2 }
 0x31a   : > { %v911_v11 = vpack.c.bf16 %v889_v10, %v887_v7 }
 0x31b   : > { %v872_v12 = vpop.f32.mrf.mxu0 }
 0x31c   : > { %1011 = vmatmul.bf16.vlgmr.msra.gmra.mxu3 %v911_v11 }
 0x321   : > { %v892_v13 = vpop.f32.mrf.mxu2 }
 0x323   : > { %v874_v14 = vpop.f32.mrf.mxu0 }
 0x324   : > { %v908_v15 = vpack.c.bf16 %v874_v14, %v872_v12 }
 0x326   : > { %996 = vmatmul.bf16.gmra.mxu1 %v908_v15 }
 0x329   : > { %v894_v16 = vpop.f32.mrf.mxu2 }
 0x32a   : > { %v912_v17 = vpack.c.bf16 %v894_v16, %v892_v13 }
 0x32b   : > { %v877_v18 = vpop.f32.mrf.mxu0 }
 0x32c   : > { %1016 = vmatmul.bf16.gmra.mxu3 %v912_v17 }
 0x331   : > { %v897_v19 = vpop.f32.mrf.mxu2 }
 0x333   : > { %v879_v20 = vpop.f32.mrf.mxu0 }
 0x334   : > { %v909_v21 = vpack.c.bf16 %v879_v20, %v877_v18 }
 0x336   : > { %1001 = vmatmul.bf16.gmra.mxu1 %v909_v21 }
 0x339   : > { %v899_v22 = vpop.f32.mrf.mxu2 }
 0x33a   : > { %v913_v23 = vpack.c.bf16 %v899_v22, %v897_v19 }
 0x33b   : > { %v882_v24 = vpop.f32.mrf.mxu0 }
 0x33c   : > { %1021 = vmatmul.bf16.gmra.mxu3 %v913_v23 }
 0x341   : > { %v902_v25 = vpop.f32.mrf.mxu2 }
 0x343   : > { %v884_v26 = vpop.f32.mrf.mxu0 }
 0x344   : > { %v910_v27 = vpack.c.bf16 %v884_v26, %v882_v24 }
 0x346   : > { %1006 = vmatmul.bf16.gmra.mxu1 %v910_v27 }
 0x349   : > { %v904_v28 = vpop.f32.mrf.mxu2 }
 0x34a   : > { %v914_v29 = vpack.c.bf16 %v904_v28, %v902_v25 }
 0x34c   : > { %1026 = vmatmul.bf16.gmra.mxu3 %v914_v29 }
 0x393   : > { %v992_v31 = vpop.f32.mrf.mxu1 }
 0x394   : > { %v2209_v32 = vadd.f32 %v1747_v30, %v992_v31 }
 0x39b   : > { %v994_v33 = vpop.f32.mrf.mxu1 }
 0x39c   : > { %v2211_v34 = vadd.f32 %v1747_v30, %v994_v33 }
 0x39f   : > { %v1012_v35 = vpop.f32.mrf.mxu3 }
 0x3a0   : > { %v2213_v36 = vadd.f32 %v1747_v30, %v1012_v35 }
 0x3a3   : > { %v997_v37 = vpop.f32.mrf.mxu1 }
 0x3a4   : > { %v2215_v38 = vadd.f32 %v1747_v30, %v997_v37 }
 0x3a7   : > { %v1014_v39 = vpop.f32.mrf.mxu3 }
 0x3a8   : > { %v2217_v40 = vadd.f32 %v1747_v30, %v1014_v39 }
 0x3ab   : > { %v999_v41 = vpop.f32.mrf.mxu1 }
 0x3ac   : > { %v2219_v42 = vadd.f32 %v1747_v30, %v999_v41 }
 0x3af   : > { %v1017_v43 = vpop.f32.mrf.mxu3 }
 0x3b0   : > { %v1018_v44 = vadd.f32 %v1747_v30, %v1017_v43 }
 0x3b3   : > { %v1002_v45 = vpop.f32.mrf.mxu1 }
 0x3b4   : > { %v2221_v46 = vadd.f32 %v1747_v30, %v1002_v45 }
 0x3b7   : > { %v1019_v47 = vpop.f32.mrf.mxu3 }
 0x3b8   : > { %v1020_v48 = vadd.f32 %v1747_v30, %v1019_v47 }
 0x3bb   : > { %v1004_v49 = vpop.f32.mrf.mxu1 }
 0x3bc   : > { %v1005_v50 = vadd.f32 %v1747_v30, %v1004_v49 }
 0x3bf   : > { %v1022_v51 = vpop.f32.mrf.mxu3 }
 0x3c0   : > { %v1023_v52 = vadd.f32 %v1747_v30, %v1022_v51 }
 0x3c3   : > { %v1007_v53 = vpop.f32.mrf.mxu1 }
 0x3c4   : > { %v1008_v54 = vadd.f32 %v1747_v30, %v1007_v53 }
 0x3c7   : > { %v1024_v55 = vpop.f32.mrf.mxu3 }
 0x3c8   : > { %v1025_v56 = vadd.f32 %v1747_v30, %v1024_v55 }
 0x3cb   : > { %v1009_v57 = vpop.f32.mrf.mxu1 }
 0x3cc   : > { %v1010_v58 = vadd.f32 %v1747_v30, %v1009_v57 }
 0x3cf   : > { %v1027_v59 = vpop.f32.mrf.mxu3 }
 0x3d0   : > { %v1028_v60 = vadd.f32 %v1747_v30, %v1027_v59 }
 0x3d4   : > { %1035 = sbr.rel (%p1469_p8) target bundleno = 997 (0x3e5), region = 80 }
 0x3d7   : > { %v1029_v61 = vpop.f32.mrf.mxu3 }
 0x3d8   : > { %v1030_v62 = vadd.f32 %v1747_v30, %v1029_v61 }
 0x3d9   : > { %v1036_v63 = vmax.f32 %v2209_v32, 0.0  ;;  %v1037_v0 = vmax.f32 %v2211_v34, 0.0  ;;  %v1038_v1 = vmax.f32 %v2215_v38, 0.0  ;;  %v1039_v2 = vmax.f32 %v2219_v42, 0.0 }
 0x3da   : > { %v1040_v3 = vmax.f32 %v2221_v46, 0.0  ;;  %v1041_v4 = vmax.f32 %v1005_v50, 0.0  ;;  %v1042_v5 = vmax.f32 %v1008_v54, 0.0  ;;  %v1043_v6 = vmax.f32 %v1010_v58, 0.0 }
 0x3db   : > { %v1571_v7 = vpack.c.bf16 %v1037_v0, %v1036_v63  ;;  %v1576_v8 = vpack.c.bf16 %v1039_v2, %v1038_v1  ;;  %v1044_v9 = vmax.f32 %v2213_v36, 0.0  ;;  %v1045_v10 = vmax.f32 %v2217_v40, 0.0 }
 0x3dc   : > { %v1581_v11 = vpack.c.bf16 %v1041_v4, %v1040_v3  ;;  %v1586_v12 = vpack.c.bf16 %v1043_v6, %v1042_v5  ;;  %v1046_v13 = vmax.f32 %v1018_v44, 0.0  ;;  %v1047_v14 = vmax.f32 %v1020_v48, 0.0 }
 0x3dd   : > { %1572 = vst [vmem:[#allocation2] sm:$0xff] %v1571_v7   ;;  %v1591_v15 = vpack.c.bf16 %v1045_v10, %v1044_v9  ;;  %v1048_v16 = vmax.f32 %v1023_v52, 0.0  ;;  %v1049_v17 = vmax.f32 %v1025_v56, 0.0  ;;  %v1050_v18 = vmax.f32 %v1028_v60, 0.0 }
 0x3de   : > { %1615 = vst [vmem:[#allocation2 + $0x8] sm:$0xff] %v1576_v8   ;;  %v1596_v19 = vpack.c.bf16 %v1047_v14, %v1046_v13  ;;  %v1051_v20 = vmax.f32 %v1030_v62, 0.0 }
 0x3df   : > { %1616 = vst [vmem:[#allocation2 + $0x10] sm:$0xff] %v1581_v11   ;;  %v1601_v21 = vpack.c.bf16 %v1049_v17, %v1048_v16 }
 0x3e0   : > { %1617 = vst [vmem:[#allocation2 + $0x18] sm:$0xff] %v1586_v12   ;;  %v1606_v22 = vpack.c.bf16 %v1051_v20, %v1050_v18 }
 0x3e1   : > { %1618 = vst [vmem:[#allocation2 + $0x20] sm:$0xff] %v1591_v15  }
 0x3e2   : > { %1619 = vst [vmem:[#allocation2 + $0x28] sm:$0xff] %v1596_v19  }
 0x3e3   : > { %1620 = vst [vmem:[#allocation2 + $0x30] sm:$0xff] %v1601_v21  }
 0x3e4   : > { %1621 = vst [vmem:[#allocation2 + $0x38] sm:$0xff] %v1606_v22  }
 0x3e5 PF: > { %p1470_p9 = scmp.ne.s32.totalorder %s1980_s21, 2 }
 0x3e7   : > { %1091 = sbr.rel (%p1470_p9) target bundleno = 1164 (0x48c), region = 84 }
 0x3ec   : > { %1094 = vmatpush.msra.mxu0 %v1030_v62  ;;  %v1093_v23 = vld [vmem:[#allocation12] sm:$0xff]  ;;  %v1092_v24 = vld [vmem:[#allocation4] sm:$0xff] }
 0x3ee   : > { %1095 = vmatpush.msra.mxu0 %v1028_v60 }
 0x3f0   : > { %1096 = vmatpush.msra.mxu0 %v1025_v56 }
 0x3f2   : > { %1097 = vmatpush.msra.mxu0 %v1023_v52 }
 0x3f4   : > { %1098 = vmatpush.msra.mxu0 %v1020_v48 }
 0x3f6   : > { %1099 = vmatpush.msra.mxu0 %v1018_v44 }
 0x3f8   : > { %1100 = vmatpush.msra.mxu0 %v2217_v40 }
 0x3fa   : > { %1101 = vmatpush.msra.mxu0 %v2213_v36 }
 0x3fc   : > { %1102 = vmatpush.msra.mxu0 %v1010_v58 }
 0x3fe   : > { %1103 = vmatpush.msra.mxu0 %v1008_v54 }
 0x400   : > { %1104 = vmatpush.msra.mxu0 %v1005_v50 }
 0x402   : > { %1105 = vmatpush.msra.mxu0 %v2221_v46 }
 0x404   : > { %1106 = vmatpush.msra.mxu0 %v2219_v42 }
 0x406   : > { %1107 = vmatpush.msra.mxu0 %v2215_v38 }
 0x408   : > { %1108 = vmatpush.msra.mxu0 %v2211_v34 }
 0x40a   : > { %1109 = vmatpush.msra.mxu0 %v2209_v32 }
 0x40b   : > { %1110 = vmatmul.f32.vlgmr.msra.gmra.mxu0 %v1093_v23 }
 0x488   : > { %v1111_v25 = vpop.f32.mrf.mxu0 }
 0x489   : > { %v1114_v26 = vadd.f32 %v1111_v25, %v1092_v24 }
 0x48b   : > { %1115 = vst [vmem:[#allocation4] sm:$0xff] %v1114_v26 }
 0x48c PF: > { %p1116_p10 = scmp.eq.s32.totalorder %s1980_s21, 2 }
 0x48d   : > { %v1122_v27 = vlaneseq (%p1116_p10) }
 0x48e   : > { %1120 = sbr.rel (!%p1116_p10) target bundleno = 1427 (0x593), region = 88 }
 0x48f   : > { %v1123_v29 = vand.u32 (%p1116_p10), 127, %v1122_v27 }
 0x491   : > { %vm1124_vm0 = vcmp.lt.s32.totalorder (%p1116_p10), %v1123_v29, 3 }
 0x492   : > { %v1121_v28 = vld [vmem:[#allocation4] sm:$0xff] (%p1116_p10) }
 0x493   : > { %v1125_v30 = vsel %vm1124_vm0, %v1121_v28, -1e+30 }
 0x494   : > { %1126 = vmax.xlane.f32.xlu0 %v1125_v30 }
 0x507   : > { %v1127_v31 = vpop.xlane.xlu0 %1126 }
 0x508   : > { %v1128_v33 = vsub.f32 %v1125_v30, %v1127_v31 }
 0x50a   : > { %v1129_v34 = vmul.f32 1.442695, %v1128_v33 }
 0x50c   : > { %1748 = vpow2.f32 %v1129_v34 }
 0x512   : > { %v1749_v32 = vpop.eup %1748 }
 0x513   : > { %1131 = vadd.xlane.f32.xlu0 %v1749_v32 }
 0x586   : > { %v1132_v35 = vpop.xlane.xlu0 %1131 }
 0x587   : > { %1750 = vlog2.f32 %v1132_v35 }
 0x58d   : > { %v1751_v36 = vpop.eup %1750 }
 0x58e   : > { %v1134_v37 = vmul.f32 0.6931472, %v1751_v36 }
 0x590   : > { %v1135_v38 = vsub.f32 %v1128_v33, %v1134_v37 }
 0x592   : > { %1136 = vst [vmem:[#allocation14] sm:$0xff] %v1135_v38 }
 0x593 PF: > { %p1689_p11 = scmp.eq.s32.totalorder %s2094_s25, 2  ;;  %s1145_s28 = sshll.u32 %s2267_s5, 4  ;;  %s1146_s28 = int_to_ptr.hbm [resolvable:$true] %s1145_s28 }
 0x594   : > { %s1996_s6 = smov [#allocation14]  }
 0x595   : > { %s1143_s18 = sshll.u32 %s1996_s6, 4  ;;  %s1144_s18 = int_to_ptr.vmem [resolvable:$true] %s1143_s18 }
 0x596   : > { %1667 = dma.vmem_to_hbm [thread:$0]  (%p1689_p11), %s1144_s18, 128, %s1146_s28, [#allocation8]  }
 0x597   : > { %1963 = dma.done.wait (%p1689_p11), [#allocation8], 128  }
 0x598   : > { %1965 = vsyncadd (%p1689_p11), [#allocation8], 4294967168 }
 0x599 PF: > { %s21_s23 = sadd.s32 1, %s1988_s23   ;;  %s2280_s25 = sld [smem:[#allocation24_spill]] }
 0x59a   : > { %p18_p12 = scmp.ge.s32.totalorder %s21_s23, 5   ;;  %s2281_s18 = smov %s1972_s19 }
 0x59b   : > { %s2282_s19 = smov %s1976_s20  ;;  %s2283_s20 = smov %s2074_s30 }
 0x59c   : > { %s2284_s21 = smov %s1984_s22  ;;  %20 = sbr.rel (!%p18_p12) target bundleno = 10 (0xa), region = 133 }
 0x59f   : > { %s2285_s22 = smov %s2280_s25 }
 0x5a1   :  { %1159 = vsyncpa [#allocation7], 1 }
 0x5a2   :  { %1161 = vsyncpa [#allocation7 + $0x1], 1 }
 0x5a3   :  { %1162 = vsyncpa [#allocation10], 1 }
 0x5a4   :  { %1164 = vsyncpa [#allocation10 + $0x1], 1 }
 0x5a5   :  { %1165 = vsyncpa [#allocation13], 1 }
 0x5a6   :  { %1166 = vsyncpa [#allocation8], 1 }
 0x5a7   :  { %1168 = vsyncpa [#allocation8 + $0x1], 1 }
 0x5a8   :  { %1169 = vsyncmov [#allocation5] }
 0x5ab   :  { %s1170_s29 = vpop.sfrf %1169 }
 0x5ac   :  { %p1476_p13 = scmp.ne.s32.totalorder %s1170_s29, 0 }
 0x5ae   :  { %1174 = shalt.err (%p1476_p13)  }

</bundles_post_ra>
